<compile_context>
chip_gen: v7x
topology: tpu7x:2x2x1
jax: 0.10.0
libtpu: 0.0.40
codegen_flags: <defaults>
</compile_context>

<pallas_src>
import math

import jax
import jax.numpy as jnp
from jax.experimental import pallas as pl
from jax.experimental.pallas import tpu as pltpu

# ---- small demo hyper-parameters consistent with a Dinov2 embeddings block ----
BATCH = 2
CHANNELS = 3
IMG = 16                      # H = W = 16
PATCH = 4                     # kernel_size = stride = 4
HIDDEN = 32                   # hidden_size D
NUM_PATCHES_SIDE = IMG // PATCH          # 4
NUM_PATCHES = NUM_PATCHES_SIDE ** 2      # 16
SEQ = NUM_PATCHES + 1                    # 17 (CLS + patches)
PATCH_DIM = CHANNELS * PATCH * PATCH     # 48 (= K, im2col feature size)


def dino_embeddings_kernel(patches_ref, w_ref, addend_ref, o_ref):
    """patches: (BB, N, K) bf16   w: (K, D) bf16   addend: (S, D) f32   o: (BB, S, D).

    addend row 0   = pos_emb[0]  + cls_token    (CLS slot)
    addend rows 1: = pos_emb[1:] + conv bias    (patch slots)
    """
    bb, n, k = patches_ref.shape
    d = w_ref.shape[1]

    # ONE MXU matmul over every patch row in this batch block (no per-image loop).
    # Merging (BB, N) -> BB*N is layout-preserving (N is a multiple of the sublane tile).
    proj = jnp.dot(patches_ref[...].reshape(bb * n, k), w_ref[...],
                   preferred_element_type=jnp.float32)            # (BB*N, D) f32
    proj = proj.reshape(bb, n, d)

    add = addend_ref[...]                                          # (S, D) f32
    # CLS row: purely additive (pos[0] + cls), no projection.
    o_ref[:, 0:1, :] = jnp.broadcast_to(add[0:1, :], (bb, 1, d)).astype(o_ref.dtype)
    # Patch rows 1..N: projection + (pos + conv bias); one sublane-offset VMEM store.
    o_ref[:, 1:, :] = (proj + add[1:, :][None, :, :]).astype(o_ref.dtype)


def dino_embeddings(pixel_values, params):
    """pixel_values: (B, C, H, W) float32. Returns (B, 1 + N, D) embeddings."""
    B, C, H, W = pixel_values.shape
    nh, nw = H // PATCH, W // PATCH
    n_patches = nh * nw
    seq = n_patches + 1
    k = C * PATCH * PATCH
    d = HIDDEN
    out_dtype = pixel_values.dtype

    # im2col (pure layout; XLA fuses it with the bf16 cast): (B, N, K) with
    # n = i*nw + j, k = c*P*P + p*P + q  == Conv2d(kernel=stride=P).flatten(2).transpose(1,2).
    patches = pixel_values.reshape(B, C, nh, PATCH, nw, PATCH)
    patches = patches.transpose(0, 2, 4, 1, 3, 5).reshape(B, n_patches, k)
    patches = patches.astype(jnp.bfloat16)

    # Conv2d weight (D, C, P, P) -> (K, D) so the kernel computes x @ W; bf16 MXU path.
    w2 = params["conv_w"].reshape(d, k).T.astype(jnp.bfloat16)

    # Precompute the additive (S, D) slab in f32 (CLS at row 0, conv bias elsewhere).
    pos = params["pos"].reshape(seq, d).astype(jnp.float32)
    cls_tok = params["cls"].reshape(1, d).astype(jnp.float32)
    bias = params["conv_b"].reshape(1, d).astype(jnp.float32)
    addend = jnp.concatenate([pos[:1] + cls_tok, pos[1:] + bias], axis=0)  # (S, D)

    # Batch block: feed ~>=128 rows to the MXU per dot when images are small, but keep
    # the grid as parallel as possible (v7x has 2 TensorCores).  At real Dinov2 shapes
    # (N=256) this degenerates to block_b=1 and a fully parallel per-image grid.
    block_b = math.gcd(B, max(1, 128 // n_patches))
    grid = (B // block_b,)

    cost = pl.CostEstimate(
        flops=2 * B * n_patches * k * d,
        transcendentals=0,
        bytes_accessed=(patches.size * 2 + w2.size * 2
                        + addend.size * 4 + B * seq * d * 4))

    return pl.pallas_call(
        dino_embeddings_kernel,
        out_shape=jax.ShapeDtypeStruct((B, seq, d), out_dtype),
        grid=grid,
        in_specs=[
            pl.BlockSpec((block_b, n_patches, k), lambda i: (i, 0, 0)),  # patches (blocked)
            pl.BlockSpec((k, d), lambda i: (0, 0)),                      # weight (resident)
            pl.BlockSpec((seq, d), lambda i: (0, 0)),                    # addend (resident)
        ],
        out_specs=pl.BlockSpec((block_b, seq, d), lambda i: (i, 0, 0)),
        compiler_params=pltpu.CompilerParams(
            dimension_semantics=("parallel",),
            vmem_limit_bytes=32 * 1024 * 1024),
        cost_estimate=cost,
    )(patches, w2, addend)


def _reference(x, p):
    """Pure-JAX reference of HF Dinov2Embeddings.forward (eval, no mask), f32 HIGHEST."""
    B = x.shape[0]
    y = jax.lax.conv_general_dilated(
        x, p["conv_w"], window_strides=(PATCH, PATCH), padding="VALID",
        dimension_numbers=("NCHW", "OIHW", "NCHW"),
        precision=jax.lax.Precision.HIGHEST)                 # (B, D, nh, nw)
    y = y + p["conv_b"][None, :, None, None]
    y = y.reshape(B, HIDDEN, NUM_PATCHES).transpose(0, 2, 1)  # (B, N, D)
    cls = jnp.broadcast_to(p["cls"], (B, 1, HIDDEN))
    y = jnp.concatenate([cls, y], axis=1)                     # (B, S, D)
    y = y + p["pos"]                  # pos-emb interpolation is identity here
    return y                          # dropout p=0.0 -> identity


def _init_params(key):
    """Deterministic synthetic parameters in HF/PyTorch layouts."""
    kw, kb, kc, kp = jax.random.split(key, 4)
    return {
        "conv_w": jax.random.normal(kw, (HIDDEN, CHANNELS, PATCH, PATCH),
                                    jnp.float32) * 0.02,
        "conv_b": jax.random.normal(kb, (HIDDEN,), jnp.float32) * 0.02,
        "cls": jax.random.normal(kc, (1, 1, HIDDEN), jnp.float32) * 0.02,
        "pos": jax.random.normal(kp, (1, SEQ, HIDDEN), jnp.float32) * 0.02,
    }


if __name__ == "__main__":
    key = jax.random.PRNGKey(0)
    kx, kparams = jax.random.split(key)
    x = jax.random.normal(kx, (BATCH, CHANNELS, IMG, IMG), jnp.float32)
    params = _init_params(kparams)

    out = jax.block_until_ready(dino_embeddings(x, params))
    ref = _reference(x, params)

    assert out.shape == (BATCH, SEQ, HIDDEN)
    # bf16 MXU inputs vs. the f32 HIGHEST-precision reference -> loosened tolerance.
    assert jnp.allclose(out, ref, atol=1e-2, rtol=1e-2), "mismatch vs reference"
    print("KERNEL_OK")
</pallas_src>

<mosaic_0001>
module attributes {stable_mosaic.version = 11 : i64} {
  func.func @dino_embeddings_kernel(%arg0: i32, %arg1: memref<2x16x48xbf16, #tpu.memory_space<vmem>>, %arg2: memref<48x32xbf16, #tpu.memory_space<vmem>>, %arg3: memref<17x32xf32, #tpu.memory_space<vmem>>, %arg4: memref<2x17x32xf32, #tpu.memory_space<vmem>>) attributes {dimension_semantics = [#tpu.dimension_semantics<parallel>], iteration_bounds = array<i64: 1>, scalar_prefetch = 0 : i64, scratch_operands = 0 : i64, tpu.core_type = #tpu.core_type<tc>, window_params = [{transform_indices = @transform_0, window_bounds = array<i64: 2, 16, 48>}, {pipeline_mode = #tpu.pipeline_mode<synchronous>, transform_indices = @transform_1, window_bounds = array<i64: 48, 32>}, {pipeline_mode = #tpu.pipeline_mode<synchronous>, transform_indices = @transform_2, window_bounds = array<i64: 17, 32>}, {transform_indices = @transform_3, window_bounds = array<i64: 2, 17, 32>}]} {
    %c0 = arith.constant 0 : index
    %c0_0 = arith.constant 0 : index
    %c0_1 = arith.constant 0 : index
    %0 = vector.load %arg1[%c0, %c0_0, %c0_1] : memref<2x16x48xbf16, #tpu.memory_space<vmem>>, vector<2x16x48xbf16>
    %1 = vector.shape_cast %0 : vector<2x16x48xbf16> to vector<32x48xbf16>
    %c0_2 = arith.constant 0 : index
    %c0_3 = arith.constant 0 : index
    %2 = vector.load %arg2[%c0_2, %c0_3] : memref<48x32xbf16, #tpu.memory_space<vmem>>, vector<48x32xbf16>
    %cst = arith.constant dense<0.000000e+00> : vector<32x32xf32>
    %3 = tpu.matmul %1, %2, %cst {dimension_numbers = #tpu.dot_dimension_numbers<[1], [0], [0], [1], [0, 0, 1, 1], [], []>} : vector<32x48xbf16>, vector<48x32xbf16>, vector<32x32xf32> -> vector<32x32xf32>
    %4 = vector.shape_cast %3 : vector<32x32xf32> to vector<2x16x32xf32>
    %c0_4 = arith.constant 0 : index
    %c0_5 = arith.constant 0 : index
    %5 = vector.load %arg3[%c0_4, %c0_5] : memref<17x32xf32, #tpu.memory_space<vmem>>, vector<17x32xf32>
    %6 = vector.extract_strided_slice %5 {offsets = [0, 0], sizes = [1, 32], strides = [1, 1]} : vector<17x32xf32> to vector<1x32xf32>
    %7 = vector.shape_cast %6 : vector<1x32xf32> to vector<1x1x32xf32>
    %8 = vector.broadcast %7 : vector<1x1x32xf32> to vector<2x1x32xf32>
    %c0_6 = arith.constant 0 : index
    %c0_7 = arith.constant 0 : index
    %c0_8 = arith.constant 0 : index
    %9 = vector.load %arg4[%c0_6, %c0_7, %c0_8] : memref<2x17x32xf32, #tpu.memory_space<vmem>>, vector<2x1x32xf32>
    tpu.vector_store %arg4[%c0_6, %c0_7, %c0_8], %8 {strides = array<i32>} : memref<2x17x32xf32, #tpu.memory_space<vmem>>, vector<2x1x32xf32>,
    %10 = vector.extract_strided_slice %5 {offsets = [1, 0], sizes = [16, 32], strides = [1, 1]} : vector<17x32xf32> to vector<16x32xf32>
    %11 = vector.shape_cast %10 : vector<16x32xf32> to vector<1x16x32xf32>
    %12 = vector.broadcast %11 : vector<1x16x32xf32> to vector<2x16x32xf32>
    %13 = arith.addf %4, %12 : vector<2x16x32xf32>
    %c0_9 = arith.constant 0 : index
    %c1 = arith.constant 1 : index
    %c0_10 = arith.constant 0 : index
    %14 = vector.load %arg4[%c0_9, %c1, %c0_10] : memref<2x17x32xf32, #tpu.memory_space<vmem>>, vector<2x16x32xf32>
    tpu.vector_store %arg4[%c0_9, %c1, %c0_10], %13 {strides = array<i32>} : memref<2x17x32xf32, #tpu.memory_space<vmem>>, vector<2x16x32xf32>,
    return
  }
  func.func @transform_0(%arg0: i32) -> (i32, i32, i32) {
    %c0_i32 = arith.constant 0 : i32
    %c0_i32_0 = arith.constant 0 : i32
    %c0_i32_1 = arith.constant 0 : i32
    return %arg0, %c0_i32, %c0_i32_0 : i32, i32, i32
  }
  func.func @transform_1(%arg0: i32) -> (i32, i32) {
    %c0_i32 = arith.constant 0 : i32
    %c0_i32_0 = arith.constant 0 : i32
    %c0_i32_1 = arith.constant 0 : i32
    return %c0_i32, %c0_i32_0 : i32, i32
  }
  func.func @transform_2(%arg0: i32) -> (i32, i32) {
    %c0_i32 = arith.constant 0 : i32
    %c0_i32_0 = arith.constant 0 : i32
    %c0_i32_1 = arith.constant 0 : i32
    return %c0_i32, %c0_i32_0 : i32, i32
  }
  func.func @transform_3(%arg0: i32) -> (i32, i32, i32) {
    %c0_i32 = arith.constant 0 : i32
    %c0_i32_0 = arith.constant 0 : i32
    %c0_i32_1 = arith.constant 0 : i32
    return %arg0, %c0_i32, %c0_i32_0 : i32, i32, i32
  }
}

</mosaic_0001>

<bundles_post_ra>
// kernel: tpu_custom_call.1
= control target key start
LH: loop header
LB: loop body
LE: loop exit
PB: predicated region body
PF: predicated region fallthrough
CT: control target
= control target key end

     0   :  { %vm53_vm0 = vcmask 392192   ;;  %vm118_vm1 = vcmask 1046528   ;;  %vm112_vm2 = vcmask 253952   ;;  %vm130_vm3 = vcmask 261120   ;;  %s228_s1 = inlined_call_operand.vmem [shape: bf16[48,32], index: 1, kind: input, shape index: {}]   ;;  %s229_s0 = inlined_call_operand.vmem [shape: bf16[2,16,48], index: 0, kind: input, shape index: {}]   ;;  %s230_s2 = inlined_call_operand.vmem [shape: f32[17,32], index: 2, kind: input, shape index: {}]   ;;  %s231_s3 = inlined_call_operand.vmem [shape: f32[2,17,32], index: 3, kind: output, shape index: {}]  }
   0x1   :  { %v161_v0 = vld [vmem:[%s228_s1] sm:$0xff]   ;;  %v162_v1 = vld [vmem:[%s228_s1 + $0x8] sm:$0xff]   ;;  %v163_v3 = vld [vmem:[%s228_s1 + $0x10] sm:$0xff]  }
   0x2   :  { %151 = vmatprep.subr.bf16.mxu0 %v161_v0  ;;  %v164_v2 = vld [vmem:[%s229_s0] sm:$0xff]   ;;  %v165_v4 = vld [vmem:[%s229_s0 + $0x8] sm:$0xff]   ;;  %v111_v10 = vld [vmem:[%s230_s2 + $0x10] sm:$0x1] }
   0x3   :  { %152 = vmatpush3.bf16.msra.mxu0 %v161_v0  ;;  %157 = vmatprep.mubr.msk.bf16.mxu0 %vm53_vm0, %v164_v2  ;;  %v109_v5 = vld [vmem:[%s230_s2] sm:$0xff]  ;;  %v110_v6 = vld [vmem:[%s230_s2 + $0x8] sm:$0xff]  ;;  %v122_v11 = vrot.slane %v111_v10, 1 }
   0x4   :  { %153 = vmatprep.subr.bf16.mxu0 %v162_v1  ;;  %v119_v7 = vrot.slane %v109_v5, 1  ;;  %v120_v8 = vrot.slane %v110_v6, 1  ;;  %113 = vst.msk [vmem:[%s231_s3] sm:$0x1] %vm112_vm2, %v109_v5  ;;  %114 = vst.msk [vmem:[%s231_s3 + $0x18] sm:$0x1] %vm112_vm2, %v109_v5 }
   0x6   :  { %v121_v9 = vsel %vm118_vm1, %v119_v7, %v120_v8  ;;  %v123_v13 = vsel %vm118_vm1, %v120_v8, %v122_v11 }
   0x7   :  { %154 = vmatpush3.bf16.msra.mxu0 %v162_v1 }
   0x8   :  { %155 = vmatprep.subr.bf16.mxu0 %v163_v3 }
   0xb   :  { %156 = vmatpush3.bf16.msra.mxu0 %v163_v3 }
   0xe   :  { %158 = vmatmul.mubr.msk.bf16.vlgmr.msra.gmra.mrb[0].mxu0 %vm53_vm0, %v165_v4 }
  0xe1   :  { %v159_v12 = vpop.f32.mrb[0].mxu0 }
  0xe2   :  { %v128_v14 = vadd.f32 %v159_v12, %v121_v9  ;;  %v94_v15 = vpop.f32.mrb[1].mxu0 }
  0xe3   :  { %v126_v16 = vadd.f32 %v121_v9, %v94_v15  ;;  %v160_v17 = vpop.f32.mrb[2].mxu0 }
  0xe4   :  { %133 = vst.msk [vmem:[%s231_s3 + $0x19] sm:$0xff] %vm130_vm3, %v128_v14  ;;  %v129_v18 = vadd.f32 %v160_v17, %v123_v13  ;;  %v97_v19 = vpop.f32.mrb[3].mxu0 }
  0xe5   :  { %131 = vst.msk [vmem:[%s231_s3 + $0x1] sm:$0xff] %vm130_vm3, %v126_v16  ;;  %v127_v20 = vadd.f32 %v123_v13, %v97_v19 }
  0xe6   :  { %134 = vst.msk [vmem:[%s231_s3 + $0x21] sm:$0xff] %vm130_vm3, %v129_v18 }
  0xe7   :  { %132 = vst.msk [vmem:[%s231_s3 + $0x9] sm:$0xff] %vm130_vm3, %v127_v20 }

</bundles_post_ra>
